<compile_context>
chip_gen: v6e
topology: v6e:2x2x1
jax: 0.10.0
libtpu: 0.0.40
codegen_flags: <defaults>
</compile_context>

<pallas_src>
import jax
import jax.numpy as jnp
from jax import lax
from jax.experimental import pallas as pl
from jax.experimental.pallas import tpu as pltpu

IN_FEATURES = 28 * 28   # 784
HIDDEN = 128
OUT_FEATURES = 1

DEFAULT_BLOCK_B = 2048          # upper bound on rows per batch tile
_MAX_PARALLEL_TILES = 4         # guarantee >=2..4 grid steps for megacore (v7x)


def _round_up(x, m):
    return ((x + m - 1) // m) * m


def _mlp_kernel(x_ref, w1_ref, b1_ref, w2_ref, b2_ref, o_ref):
    # x_ref:  (TB, 784)  caller dtype (f32/bf16) -- batch tile of activations
    # w1_ref: (784, 128) bf16   -- VMEM-resident across all grid steps
    # b1_ref: (1, 128)   f32
    # w2_ref: (1, 128)   f32    -- output-layer weight as a row
    # b2_ref: (1, 1)     f32
    # o_ref:  (1, TB)    f32    -- lane-dense output tile
    #
    # Cast to bf16 in-kernel (VPU, hidden under the x DMA) so the MXU runs its
    # fast bf16 path; accumulate in f32.
    x = x_ref[...].astype(jnp.bfloat16)
    h = jnp.dot(x, w1_ref[...], preferred_element_type=jnp.float32)   # (TB,128) MXU
    h = jnp.maximum(h + b1_ref[...], 0.0)                             # bias+ReLU, VPU
    # Layer 2 on the MXU, contracted so the result is lane-dense (1, TB):
    # (1,128) . (TB,128)^T -> (1, TB), f32 throughout (cost is negligible).
    y = lax.dot_general(w2_ref[...], h,
                        dimension_numbers=(((1,), (1,)), ((), ())),
                        preferred_element_type=jnp.float32)
    o_ref[...] = (y + b2_ref[...]).astype(o_ref.dtype)


def _choose_tiling(batch, block_b):
    """Balanced batch tiles; >=2 (up to 4) tiles when batch allows, tb%128==0
    in the multi-tile case so the lane-dense output block is legal."""
    n_tiles = max(pl.cdiv(batch, block_b), min(_MAX_PARALLEL_TILES, batch // 128))
    n_tiles = max(n_tiles, 1)
    if n_tiles == 1:
        tb = _round_up(max(batch, 1), 8)     # single block == (padded) full batch
    else:
        tb = _round_up(pl.cdiv(batch, n_tiles), 128)
        n_tiles = pl.cdiv(batch, tb)
    return n_tiles, tb


def simple_nn_forward(x, w1, b1, w2, b2, *, block_b=DEFAULT_BLOCK_B):
    """Forward pass of SimpleNN.

    x:  (N, 1, 28, 28) or (N, 784), any float dtype (streamed as-is, cast
        to bf16 inside the kernel).
    w1: (784, 128), b1: (1, 128), w2: (128, 1), b2: (1, 1).
    Returns (N, 1) float32.
    """
    x2d = jnp.reshape(x, (-1, IN_FEATURES))
    batch = x2d.shape[0]

    # Weight/bias relayouts are tiny one-time ops (W1 is only 392 KiB f32).
    w1_bf = w1.astype(jnp.bfloat16)
    b1_row = jnp.reshape(b1, (1, HIDDEN)).astype(jnp.float32)
    w2_row = jnp.reshape(w2, (1, HIDDEN)).astype(jnp.float32)  # (128,1)->(1,128)
    b2_row = jnp.reshape(b2, (1, OUT_FEATURES)).astype(jnp.float32)

    n_tiles, tb = _choose_tiling(batch, block_b)
    n_pad = n_tiles * tb
    grid = (n_tiles,)

    out = pl.pallas_call(
        _mlp_kernel,
        # Lane-dense output: one f32 row of n_pad lanes, written tb lanes/step.
        out_shape=jax.ShapeDtypeStruct((1, n_pad), jnp.float32),
        grid_spec=pltpu.PrefetchScalarGridSpec(
            num_scalar_prefetch=0,
            grid=grid,
            in_specs=[
                # Activation tile marches down the batch; auto double-buffered.
                # (Sweep pipeline_mode=pl.Buffered(3) on v7x if DMA-issue
                # latency shows up; default depth 2 is fine elsewhere.)
                pl.BlockSpec((tb, IN_FEATURES), lambda i: (i, 0)),
                # Weights / biases: same block every step -> VMEM-resident.
                pl.BlockSpec((IN_FEATURES, HIDDEN), lambda i: (0, 0)),
                pl.BlockSpec((1, HIDDEN), lambda i: (0, 0)),
                pl.BlockSpec((1, HIDDEN), lambda i: (0, 0)),
                pl.BlockSpec((1, OUT_FEATURES), lambda i: (0, 0)),
            ],
            out_specs=pl.BlockSpec((1, tb), lambda i: (0, i)),
        ),
        compiler_params=pltpu.CompilerParams(
            # Batch tiles are independent -> shard across v7x's two TensorCores.
            dimension_semantics=("parallel",),
            # f32 x tiles at tb=2048 are ~6.1 MiB x2 buffers plus kernel
            # temporaries; 48 MiB covers that with headroom and lifts v5e's
            # 16 MiB scoped default while staying below v7x's 64 MiB physical.
            vmem_limit_bytes=48 * 1024 * 1024,
        ),
    )(x2d, w1_bf, b1_row, w2_row, b2_row)

    # (1, n_pad) -> (n_pad, 1) is a contiguous reshape; slice off padded rows.
    return jnp.reshape(out, (n_pad, OUT_FEATURES))[:batch]


def init_params(key):
    """Deterministic init mimicking nn.Linear's U(-1/sqrt(fan_in), 1/sqrt(fan_in))."""
    k1, k2, k3, k4 = jax.random.split(key, 4)
    bound1 = 1.0 / jnp.sqrt(jnp.float32(IN_FEATURES))
    bound2 = 1.0 / jnp.sqrt(jnp.float32(HIDDEN))
    w1 = jax.random.uniform(k1, (IN_FEATURES, HIDDEN), jnp.float32,
                            minval=-bound1, maxval=bound1)
    b1 = jax.random.uniform(k2, (1, HIDDEN), jnp.float32,
                            minval=-bound1, maxval=bound1)
    w2 = jax.random.uniform(k3, (HIDDEN, OUT_FEATURES), jnp.float32,
                            minval=-bound2, maxval=bound2)
    b2 = jax.random.uniform(k4, (1, OUT_FEATURES), jnp.float32,
                            minval=-bound2, maxval=bound2)
    return w1, b1, w2, b2


if __name__ == "__main__":
    key = jax.random.PRNGKey(0)
    kx, kp = jax.random.split(key)

    # Small MNIST-like batch: (N, C, H, W) = (8, 1, 28, 28)
    x = jax.random.normal(kx, (8, 1, 28, 28), jnp.float32)
    w1, b1, w2, b2 = init_params(kp)

    out = simple_nn_forward(x, w1, b1, w2, b2)
    out = jax.block_until_ready(out)
    assert out.shape == (8, 1)

    # Reference with the same bf16 rounding of x / W1 (f32 accumulation) that
    # the kernel performs, so the tolerance stays tight.
    x2d = jnp.reshape(x, (-1, IN_FEATURES))
    xb = x2d.astype(jnp.bfloat16).astype(jnp.float32)
    w1b = w1.astype(jnp.bfloat16).astype(jnp.float32)
    ref_bf = jnp.maximum(xb @ w1b + b1, 0.0) @ w2 + b2
    assert jnp.allclose(out, ref_bf, atol=1e-3, rtol=1e-3)

    # Loose sanity check against the pure-f32 reference (bf16 rounding error).
    ref_f32 = jnp.maximum(x2d @ w1 + b1, 0.0) @ w2 + b2
    assert jnp.allclose(out, ref_f32, atol=3e-2, rtol=3e-2)

    print("KERNEL_OK")
</pallas_src>

<mosaic_0001>
module attributes {stable_mosaic.version = 11 : i64} {
  func.func @_mlp_kernel(%arg0: i32, %arg1: memref<8x784xf32, #tpu.memory_space<vmem>>, %arg2: memref<784x128xbf16, #tpu.memory_space<vmem>>, %arg3: memref<1x128xf32, #tpu.memory_space<vmem>>, %arg4: memref<1x128xf32, #tpu.memory_space<vmem>>, %arg5: memref<1x1xf32, #tpu.memory_space<vmem>>, %arg6: memref<1x8xf32, #tpu.memory_space<vmem>>) attributes {dimension_semantics = [#tpu.dimension_semantics<parallel>], iteration_bounds = array<i64: 1>, scalar_prefetch = 0 : i64, scratch_operands = 0 : i64, tpu.core_type = #tpu.core_type<tc>, window_params = [{transform_indices = @transform_0, window_bounds = array<i64: 8, 784>}, {pipeline_mode = #tpu.pipeline_mode<synchronous>, transform_indices = @transform_1, window_bounds = array<i64: 784, 128>}, {pipeline_mode = #tpu.pipeline_mode<synchronous>, transform_indices = @transform_2, window_bounds = array<i64: 1, 128>}, {pipeline_mode = #tpu.pipeline_mode<synchronous>, transform_indices = @transform_3, window_bounds = array<i64: 1, 128>}, {pipeline_mode = #tpu.pipeline_mode<synchronous>, transform_indices = @transform_4, window_bounds = array<i64: 1, 1>}, {transform_indices = @transform_5, window_bounds = array<i64: 1, 8>}]} {
    %c0 = arith.constant 0 : index
    %c0_0 = arith.constant 0 : index
    %0 = vector.load %arg1[%c0, %c0_0] : memref<8x784xf32, #tpu.memory_space<vmem>>, vector<8x784xf32>
    %1 = arith.truncf %0 : vector<8x784xf32> to vector<8x784xbf16>
    %c0_1 = arith.constant 0 : index
    %c0_2 = arith.constant 0 : index
    %2 = vector.load %arg2[%c0_1, %c0_2] : memref<784x128xbf16, #tpu.memory_space<vmem>>, vector<784x128xbf16>
    %cst = arith.constant dense<0.000000e+00> : vector<8x128xf32>
    %3 = tpu.matmul %1, %2, %cst {dimension_numbers = #tpu.dot_dimension_numbers<[1], [0], [0], [1], [0, 0, 1, 1], [], []>} : vector<8x784xbf16>, vector<784x128xbf16>, vector<8x128xf32> -> vector<8x128xf32>
    %c0_3 = arith.constant 0 : index
    %c0_4 = arith.constant 0 : index
    %4 = vector.load %arg3[%c0_3, %c0_4] : memref<1x128xf32, #tpu.memory_space<vmem>>, vector<1x128xf32>
    %5 = vector.broadcast %4 : vector<1x128xf32> to vector<8x128xf32>
    %6 = arith.addf %3, %5 : vector<8x128xf32>
    %cst_5 = arith.constant 0.000000e+00 : f32
    %7 = vector.broadcast %cst_5 : f32 to vector<8x128xf32>
    %8 = arith.maximumf %6, %7 : vector<8x128xf32>
    %c0_6 = arith.constant 0 : index
    %c0_7 = arith.constant 0 : index
    %9 = vector.load %arg4[%c0_6, %c0_7] : memref<1x128xf32, #tpu.memory_space<vmem>>, vector<1x128xf32>
    %cst_8 = arith.constant dense<0.000000e+00> : vector<1x8xf32>
    %10 = tpu.matmul %9, %8, %cst_8 {dimension_numbers = #tpu.dot_dimension_numbers<[1], [1], [0], [0], [0, 0, 1, 0], [], []>} : vector<1x128xf32>, vector<8x128xf32>, vector<1x8xf32> -> vector<1x8xf32>
    %c0_9 = arith.constant 0 : index
    %c0_10 = arith.constant 0 : index
    %11 = vector.load %arg5[%c0_9, %c0_10] : memref<1x1xf32, #tpu.memory_space<vmem>>, vector<1x1xf32>
    %12 = vector.broadcast %11 : vector<1x1xf32> to vector<1x8xf32>
    %13 = arith.addf %10, %12 : vector<1x8xf32>
    %c0_11 = arith.constant 0 : index
    %c0_12 = arith.constant 0 : index
    %14 = vector.load %arg6[%c0_11, %c0_12] : memref<1x8xf32, #tpu.memory_space<vmem>>, vector<1x8xf32>
    tpu.vector_store %arg6[%c0_11, %c0_12], %13 {strides = array<i32>} : memref<1x8xf32, #tpu.memory_space<vmem>>, vector<1x8xf32>,
    return
  }
  func.func @transform_0(%arg0: i32) -> (i32, i32) {
    %c0_i32 = arith.constant 0 : i32
    %c0_i32_0 = arith.constant 0 : i32
    return %arg0, %c0_i32 : i32, i32
  }
  func.func @transform_1(%arg0: i32) -> (i32, i32) {
    %c0_i32 = arith.constant 0 : i32
    %c0_i32_0 = arith.constant 0 : i32
    %c0_i32_1 = arith.constant 0 : i32
    return %c0_i32, %c0_i32_0 : i32, i32
  }
  func.func @transform_2(%arg0: i32) -> (i32, i32) {
    %c0_i32 = arith.constant 0 : i32
    %c0_i32_0 = arith.constant 0 : i32
    %c0_i32_1 = arith.constant 0 : i32
    return %c0_i32, %c0_i32_0 : i32, i32
  }
  func.func @transform_3(%arg0: i32) -> (i32, i32) {
    %c0_i32 = arith.constant 0 : i32
    %c0_i32_0 = arith.constant 0 : i32
    %c0_i32_1 = arith.constant 0 : i32
    return %c0_i32, %c0_i32_0 : i32, i32
  }
  func.func @transform_4(%arg0: i32) -> (i32, i32) {
    %c0_i32 = arith.constant 0 : i32
    %c0_i32_0 = arith.constant 0 : i32
    %c0_i32_1 = arith.constant 0 : i32
    return %c0_i32, %c0_i32_0 : i32, i32
  }
  func.func @transform_5(%arg0: i32) -> (i32, i32) {
    %c0_i32 = arith.constant 0 : i32
    %c0_i32_0 = arith.constant 0 : i32
    return %c0_i32, %arg0 : i32, i32
  }
}

</mosaic_0001>

<bundles_post_ra>
// kernel: tpu_custom_call.1
= control target key start
LH: loop header
LB: loop body
LE: loop exit
PB: predicated region body
PF: predicated region fallthrough
CT: control target
= control target key end

     0   :  { %s1041_s0 = inlined_call_operand.hbm [shape: f32[8,784], index: 0, kind: input, shape index: {}]   ;;  %s1042_s1 = inlined_call_operand.hbm [shape: bf16[784,128], index: 1, kind: input, shape index: {}]   ;;  %s1043_s2 = inlined_call_operand.vmem [shape: f32[1,128], index: 2, kind: input, shape index: {}]   ;;  %s1044_s3 = inlined_call_operand.vmem [shape: f32[1,128], index: 3, kind: input, shape index: {}]   ;;  %s1045_s4 = inlined_call_operand.<no memory space> [shape: f32[1,1], index: 4, kind: input, shape index: {}]   ;;  %s1046_s5 = inlined_call_operand.hbm [shape: f32[1,8], index: 5, kind: output, shape index: {}]  }
   0x1   :  { %v10_v0 = vstv %s1045_s4 }
   0x2   :  { %11 = vst [vmem:[#allocation2] sm:$0x1] %v10_v0 }
   0x3   :  { %12 = vsyncpa [#allocation4], 0 }
   0x4   :  { %13 = vsyncpa [#allocation7], 0 }
   0x5   :  { %14 = vsyncpa [#allocation5], 0  ;;  %s983_s20 = smov [#allocation3]   ;;  %s984_s22 = smov [#allocation6]  }
   0x6   :  { %s21_s21 = sshll.u32 %s983_s20, 4  ;;  %s30_s23 = sshll.u32 %s984_s22, 4  ;;  %s22_s21 = int_to_ptr.vmem [resolvable:$true] %s21_s21  ;;  %s31_s23 = int_to_ptr.vmem [resolvable:$true] %s30_s23 }
   0x7   :  { %s925_s24 = scalar_lea.vmem %s22_s21, 896  ;;  %p930_p1 = scmp.lt.s32.totalorder %s22_s21, %s22_s21 }
   0x8   :  { %p926_p0 = scmp.ne.s32.totalorder %s22_s21, %s925_s24  ;;  %p931_p2 = scmp.lt.s32.totalorder %s925_s24, %s925_s24 }
   0xa   :  { %p932_p3 = por %p931_p2, %p930_p1 }
   0xc   :  { %p933_p4 = pnand %p932_p3, %p926_p0 }
   0xe   :  { %936 = shalt.err (!%p933_p4)
}
   0xf   :  { %24 = dma.hbm_to_vmem [thread:$0]  %s1041_s0, 896, %s22_s21, [#allocation4]  }
  0x10   :  { %s945_s4 = scalar_lea.vmem %s31_s23, 6272  ;;  %p950_p6 = scmp.lt.s32.totalorder %s31_s23, %s31_s23 }
  0x11   :  { %p946_p5 = scmp.ne.s32.totalorder %s31_s23, %s945_s4  ;;  %p951_p7 = scmp.lt.s32.totalorder %s945_s4, %s945_s4 }
  0x13   :  { %p952_p8 = por %p951_p7, %p950_p6 }
  0x15   :  { %p953_p9 = pnand %p952_p8, %p946_p5 }
  0x17   :  { %956 = shalt.err (!%p953_p9)
}
  0x18   :  { %s985_s27 = smov 64   ;;  %s986_s28 = smov 4  }
  0x19   :  { %36 = dma.hbm_to_vmem [thread:$0]  %s1042_s1, 6272, %s31_s23, [#allocation7], %s985_s27, %s985_s27, %s986_s28  }
  0x1a   :  { %977 = dma.done.wait [#allocation4], 896  }
  0x1b   :  { %978 = vsyncadd [#allocation4], 4294966400 }
  0x1c   :  { %979 = dma.done.wait [#allocation7], 6272  }
  0x1d   :  { %980 = vsyncadd [#allocation7], 4294961024  ;;  %v868_v1 = vld [vmem:[#allocation6 + $0x78] sm:$0xff]   ;;  %v872_v5 = vld [vmem:[#allocation6 + $0x70] sm:$0xff]   ;;  %v987_v45 = vmov 0.0   ;;  %vm988_vm0 = vmmov 0  }
  0x1e   :  { %v869_v2 = vld [vmem:[#allocation6 + $0x38] sm:$0xff]   ;;  %778 = vmatprep.subr.bf16.mxu0 %v868_v1  ;;  %v873_v6 = vld [vmem:[#allocation6 + $0x30] sm:$0xff]   ;;  %v876_v9 = vld [vmem:[#allocation6 + $0x68] sm:$0xff]   ;;  %vm463_vm1 = vcmask 130048   ;;  %vm709_vm2 = vcmask 57344  }
  0x1f   :  { %v870_v3 = vld [vmem:[#allocation6 + $0xf8] sm:$0xff]   ;;  %779 = vmatpush3.bf16.msra.mxu0 %v869_v2  ;;  %v874_v7 = vld [vmem:[#allocation6 + $0xf0] sm:$0xff]   ;;  %v877_v10 = vld [vmem:[#allocation6 + $0x28] sm:$0xff]   ;;  %v989_v2 = vmov 0  }
  0x20   :  { %v871_v4 = vld [vmem:[#allocation6 + $0xb8] sm:$0xff]   ;;  %800 = vmatprep.subr.bf16.mxu1 %v870_v3  ;;  %780 = vmatprep.subr.bf16.mxu0 %v872_v5  ;;  %v875_v8 = vld [vmem:[#allocation6 + $0xb0] sm:$0xff]   ;;  %v878_v11 = vld [vmem:[#allocation6 + $0xe8] sm:$0xff]  }
  0x21   :  { %801 = vmatpush3.bf16.msra.mxu1 %v871_v4  ;;  %v879_v12 = vld [vmem:[#allocation6 + $0xa8] sm:$0xff]   ;;  %v880_v13 = vld [vmem:[#allocation6 + $0x60] sm:$0xff]   ;;  %v884_v17 = vld [vmem:[#allocation6 + $0x58] sm:$0xff]   ;;  %867 = vset.pattern.permute.xlu0 %v989_v2 }
  0x22   :  { %802 = vmatprep.subr.bf16.mxu1 %v874_v7  ;;  %v881_v14 = vld [vmem:[#allocation6 + $0x20] sm:$0xff]   ;;  %v885_v18 = vld [vmem:[#allocation6 + $0x18] sm:$0xff]   ;;  %v888_v21 = vld [vmem:[#allocation6 + $0x50] sm:$0xff]  }
  0x23   :  { %781 = vmatpush3.bf16.msra.mxu0 %v873_v6  ;;  %v882_v15 = vld [vmem:[#allocation6 + $0xe0] sm:$0xff]   ;;  %v886_v19 = vld [vmem:[#allocation6 + $0xd8] sm:$0xff]   ;;  %v889_v22 = vld [vmem:[#allocation6 + $0x10] sm:$0xff]  }
  0x24   :  { %782 = vmatprep.subr.bf16.mxu0 %v876_v9  ;;  %v883_v16 = vld [vmem:[#allocation6 + $0xa0] sm:$0xff]   ;;  %v887_v20 = vld [vmem:[#allocation6 + $0x98] sm:$0xff]   ;;  %v890_v23 = vld [vmem:[#allocation6 + $0xd0] sm:$0xff]  }
  0x25   :  { %803 = vmatpush3.bf16.msra.mxu1 %v875_v8  ;;  %v891_v24 = vld [vmem:[#allocation6 + $0x90] sm:$0xff]   ;;  %v892_v25 = vld [vmem:[#allocation6 + $0x48] sm:$0xff]   ;;  %v896_v29 = vld [vmem:[#allocation6 + $0x40] sm:$0xff]  }
  0x26   :  { %804 = vmatprep.subr.bf16.mxu1 %v878_v11  ;;  %v893_v26 = vld [vmem:[#allocation6 + $0x8] sm:$0xff]   ;;  %v897_v30 = vld [vmem:[#allocation6] sm:$0xff]   ;;  %v51_v32 = vld [vmem:[#allocation3 + $0x8] sm:$0xff] }
  0x27   :  { %783 = vmatpush3.bf16.msra.mxu0 %v877_v10  ;;  %v894_v27 = vld [vmem:[#allocation6 + $0xc8] sm:$0xff]   ;;  %v898_v31 = vld [vmem:[#allocation6 + $0xc0] sm:$0xff]   ;;  %v58_v33 = vpack.c.bf16 %v51_v32, %v51_v32  ;;  %v900_v37 = vld [vmem:[#allocation6 + $0x178] sm:$0xff]  }
  0x28   :  { %784 = vmatprep.subr.bf16.mxu0 %v880_v13  ;;  %v895_v28 = vld [vmem:[#allocation6 + $0x88] sm:$0xff]   ;;  %v899_v34 = vld [vmem:[#allocation6 + $0x80] sm:$0xff]   ;;  %v901_v40 = vld [vmem:[#allocation6 + $0x138] sm:$0xff]  }
  0x29   :  { %805 = vmatpush3.bf16.msra.mxu1 %v879_v12  ;;  %v50_v35 = vld [vmem:[#allocation3] sm:$0xff]  ;;  %v53_v38 = vld [vmem:[#allocation3 + $0x18] sm:$0xff]  ;;  %499 = vmatprep.mubr.bf16.mxu0 %v58_v33  ;;  %v52_v41 = vld [vmem:[#allocation3 + $0x10] sm:$0xff] }
  0x2a   :  { %806 = vmatprep.subr.bf16.mxu1 %v882_v15  ;;  %v57_v36 = vpack.c.bf16 %v50_v35, %v50_v35  ;;  %v60_v39 = vpack.c.bf16 %v53_v38, %v53_v38  ;;  %v59_v42 = vpack.c.bf16 %v52_v41, %v52_v41  ;;  %v902_v43 = vld [vmem:[#allocation6 + $0x170] sm:$0xff]   ;;  %v904_v46 = vld [vmem:[#allocation6 + $0x168] sm:$0xff]   ;;  %v906_v48 = vld [vmem:[#allocation6 + $0x160] sm:$0xff]  }
  0x2b   :  { %785 = vmatpush3.bf16.msra.mxu0 %v881_v14  ;;  %v903_v44 = vld [vmem:[#allocation6 + $0x130] sm:$0xff]   ;;  %v905_v47 = vld [vmem:[#allocation6 + $0x128] sm:$0xff]   ;;  %v907_v49 = vld [vmem:[#allocation6 + $0x120] sm:$0xff]  }
  0x2c   :  { %786 = vmatprep.subr.bf16.mxu0 %v884_v17  ;;  %539 = vmatprep.mubr.bf16.mxu1 %v60_v39  ;;  %v908_v50 = vld [vmem:[#allocation6 + $0x158] sm:$0xff]   ;;  %v910_v52 = vld [vmem:[#allocation6 + $0x150] sm:$0xff]   ;;  %v916_v53 = vld [vmem:[#allocation6 + $0x180] sm:$0xff]  }
  0x2d   :  { %807 = vmatpush3.bf16.msra.mxu1 %v883_v16  ;;  %v909_v51 = vld [vmem:[#allocation6 + $0x118] sm:$0xff]   ;;  %v55_v54 = vld [vmem:[#allocation3 + $0x28] sm:$0xff]  ;;  %v912_v59 = vld [vmem:[#allocation6 + $0x148] sm:$0xff]  }
  0x2e   :  { %808 = vmatprep.subr.bf16.mxu1 %v886_v19  ;;  %v62_v55 = vpack.c.bf16 %v55_v54, %v55_v54  ;;  %v56_v56 = vld [vmem:[#allocation3 + $0x30] sm:$0xff]  ;;  %v911_v57 = vld [vmem:[#allocation6 + $0x110] sm:$0xff]   ;;  %v913_v60 = vld [vmem:[#allocation6 + $0x108] sm:$0xff]  }
  0x2f   :  { %787 = vmatpush3.bf16.msra.mxu0 %v885_v18  ;;  %v63_v58 = vpack.c.bf16 %v56_v56, %v56_v56  ;;  %v914_v61 = vld [vmem:[#allocation6 + $0x140] sm:$0xff]   ;;  %v54_v63 = vld [vmem:[#allocation3 + $0x20] sm:$0xff] }
  0x30   :  { %788 = vmatprep.subr.bf16.mxu0 %v888_v21  ;;  %v915_v62 = vld [vmem:[#allocation6 + $0x100] sm:$0xff]   ;;  %v61_v0 = vpack.c.bf16 %v54_v63, %v54_v63 }
  0x31   :  { %809 = vmatpush3.bf16.msra.mxu1 %v887_v20  ;;  %v629_v1 = vld [vmem:[#allocation2] sm:$0x1] }
  0x32   :  { %810 = vmatprep.subr.bf16.mxu1 %v890_v23  ;;  %632 = vperm.xlu0 %867, %v629_v1   ;;  %v727_v16 = vld [vmem:[%s1043_s2] ss:$0 sm:$0xff]  ;;  %s990_s2 = smov [#allocation8]  }
  0x33   :  { %789 = vmatpush3.bf16.msra.mxu0 %v889_v22  ;;  %s717_s8 = sshll.u32 %s990_s2, 4  ;;  %s718_s8 = int_to_ptr.vmem [resolvable:$true] %s717_s8 }
  0x34   :  { %790 = vmatprep.subr.bf16.mxu0 %v892_v25  ;;  %s957_s9 = scalar_lea.vmem %s718_s8, 16  ;;  %s961_s10 = scalar_lea.vmem %s718_s8, 32 }
  0x35   :  { %811 = vmatpush3.bf16.msra.mxu1 %v891_v24  ;;  %p958_p10 = scmp.ne.s32.totalorder %s718_s8, %s957_s9  ;;  %p962_p11 = scmp.lt.s32.totalorder %s718_s8, %s718_s8 }
  0x36   :  { %812 = vmatprep.subr.bf16.mxu1 %v894_v27  ;;  %p963_p12 = scmp.lt.s32.totalorder %s961_s10, %s957_s9 }
  0x37   :  { %791 = vmatpush3.bf16.msra.mxu0 %v893_v26 }
  0x38   :  { %792 = vmatprep.subr.bf16.mxu0 %v896_v29  ;;  %v635_v29 = vlaneseq  ;;  %p964_p13 = por %p963_p12, %p962_p11 }
  0x39   :  { %813 = vmatpush3.bf16.msra.mxu1 %v895_v28  ;;  %v628_v28 = vld [vmem:[%s1044_s3] sm:$0x1] }
  0x3a   :  { %814 = vmatprep.subr.bf16.mxu1 %v898_v31  ;;  %p965_p0 = pnand %p964_p13, %p958_p10 }
  0x3b   :  { %793 = vmatpush3.bf16.msra.mxu0 %v897_v30  ;;  %v636_v30 = vshrl.u32 %v635_v29, 7 }
  0x3c   :  { %822 = vmatprep.subr.bf16.mxu0 %v900_v37 }
  0x3d   :  { %815 = vmatpush3.bf16.msra.mxu1 %v899_v34  ;;  %v637_v31 = vsub.s32 0, %v636_v30 }
  0x3e   :  { %500 = vmatmul.mubr.bf16.vlgmr.msra.gmra.mxu0 %v57_v36  ;;  %848 = vmatprep.subr.bf16.mxu1 %v987_v45 }
  0x3f   :  { %823 = vmatpush3.bf16.msra.mxu0 %v901_v40  ;;  %579 = vmatprep.mubr.bf16.mxu0 %v62_v55 }
  0x40   :  { %540 = vmatmul.mubr.bf16.vlgmr.msra.gmra.mxu1 %v59_v42  ;;  %824 = vmatprep.subr.bf16.mxu0 %v902_v43 }
  0x41   :  { %850 = vmatprep.mubr.msk.bf16.mxu1 %vm988_vm0, %v987_v45  ;;  %849 = vmatpush3.bf16.msra.mxu1 %v916_v53 }
  0x42   :  { %854 = vmatprep.subr.mxu1 %v987_v45 }
  0x43   :  { %825 = vmatpush3.bf16.msra.mxu0 %v903_v44 }
  0x44   :  { %826 = vmatprep.subr.bf16.mxu0 %v904_v46 }
  0x47   :  { %827 = vmatpush3.bf16.msra.mxu0 %v905_v47 }
  0x48   :  { %828 = vmatprep.subr.bf16.mxu0 %v906_v48  ;;  %851 = vmatmul.mubr.msk.bf16.vlgmr.msra.gmra.mxu1 %vm463_vm1, %v63_v58 }
  0x49   :  { %856 = vmatprep.mubr.msk.f32.mxu1 %vm988_vm0, %v987_v45 }
  0x4b   :  { %829 = vmatpush3.bf16.msra.mxu0 %v907_v49 }
  0x4c   :  { %830 = vmatprep.subr.bf16.mxu0 %v908_v50 }
  0x4f   :  { %831 = vmatpush3.bf16.msra.mxu0 %v909_v51 }
  0x50   :  { %832 = vmatprep.subr.bf16.mxu0 %v910_v52 }
  0x53   :  { %833 = vmatpush3.bf16.msra.mxu0 %v911_v57 }
  0x54   :  { %834 = vmatprep.subr.bf16.mxu0 %v912_v59 }
  0x57   :  { %835 = vmatpush3.bf16.msra.mxu0 %v913_v60 }
  0x58   :  { %836 = vmatprep.subr.bf16.mxu0 %v914_v61 }
  0x5b   :  { %837 = vmatpush3.bf16.msra.mxu0 %v915_v62 }
  0x5e   :  { %580 = vmatmul.mubr.bf16.vlgmr.msra.gmra.mxu0 %v61_v0 }
  0xad   :  { %v633_v32 = vpop.permute.xlu0 %632 }
  0xae   :  { %v638_v33 = vrot.slane %v633_v32, %v637_v31 }
  0xfe   :  { %v794_v3 = vpop.f32.mrf.mxu0 }
 0x100   :  { %v795_v4 = vpop.f32.mrf.mxu0  ;;  %v816_v5 = vpop.f32.mrf.mxu1 }
 0x101   :  { %v796_v15 = vadd.f32 %v795_v4, %v794_v3 }
 0x102   :  { %v797_v6 = vpop.f32.mrf.mxu0  ;;  %v817_v7 = vpop.f32.mrf.mxu1 }
 0x103   :  { %v502_v17 = vadd.f32 %v796_v15, %v727_v16  ;;  %v818_v18 = vadd.f32 %v817_v7, %v816_v5 }
 0x104   :  { %v798_v8 = vpop.f32.mrf.mxu0  ;;  %v819_v9 = vpop.f32.mrf.mxu1 }
 0x105   :  { %v542_v21 = vadd.f32 %v818_v18, %v502_v17 }
 0x106   :  { %v820_v10 = vpop.f32.mrf.mxu1 }
 0x108   :  { %v621_v11 = vpop.f32.mrf.mxu1 }
 0x10a   :  { %v852_v12 = vpop.f32.mrf.mxu1 }
 0x10c   :  { %v624_v13 = vpop.f32.mrf.mxu1 }
 0x10e   :  { %v853_v14 = vpop.f32.mrf.mxu1 }
 0x11e   :  { %v838_v19 = vpop.f32.mrf.mxu0 }
 0x120   :  { %v839_v20 = vpop.f32.mrf.mxu0 }
 0x121   :  { %v840_v22 = vadd.f32 %v839_v20, %v838_v19 }
 0x122   :  { %v841_v23 = vpop.f32.mrf.mxu0 }
 0x123   :  { %v582_v24 = vadd.f32 %v840_v22, %v542_v21 }
 0x124   :  { %v842_v25 = vpop.f32.mrf.mxu0 }
 0x125   :  { %v622_v26 = vadd.f32 %v621_v11, %v582_v24 }
 0x127   :  { %v627_v27 = vmax.f32 %v622_v26, 0.0 }
 0x129   :  { %855 = vmatpush3.xpose.msra.mxu1 %v627_v27 }
 0x12c   :  { %857 = vmatmul.mubr.f32.vlgmr.msra.gmra.mxu1 %v628_v28 }
 0x1ec   :  { %v705_v34 = vpop.f32.mrf.mxu1 }
 0x1ed   :  { %v706_v35 = vadd.f32 %v705_v34, %v638_v33 }
 0x1ee   :  { %v858_v36 = vpop.f32.mrf.mxu1 }
 0x1ef   :  { %710 = vst.msk [vmem:[#allocation8] sm:$0x1] %vm709_vm2, %v706_v35 }
 0x1f0   :  { %968 = shalt.err (!%p965_p0)
}
 0x1f1   :  { %720 = dma.vmem_to_hbm [thread:$0]  %s718_s8, 16, %s1046_s5, [#allocation5]  }
 0x1f2   :  { %981 = dma.done.wait [#allocation5], 16  }
 0x1f3   :  { %982 = vsyncadd [#allocation5], 4294967280 }
 0x1f4   :  { %724 = vsyncpa [#allocation4], 1 }
 0x1f5   :  { %725 = vsyncpa [#allocation7], 1 }
 0x1f6   :  { %726 = vsyncpa [#allocation5], 1 }

</bundles_post_ra>
